<compile_context>
chip_gen: v6e
topology: v6e:2x2x1
jax: 0.10.0
libtpu: 0.0.40
codegen_flags: <defaults>
</compile_context>

<pallas_src>
import jax
import jax.numpy as jnp
from jax.experimental import pallas as pl
from jax.experimental.pallas import tpu as pltpu


H = 10     # true hidden width of the MLP
AUG = 10   # padded hidden row used as the constant-one unit for bias folding
HP = 16    # hidden width padded to a sublane multiple (padded rows are inert)


def mlp_kernel(x_ref, w1_ref, b1_ref, w2_ref, w3_ref, o_ref):
    x = x_ref[...]                       # (1, TB)    batch on lanes

    # Layer 1: (HP,1) * (1,TB) outer-product FMA + ReLU — pure VPU (K=1, no MXU).
    # Row AUG has w1=0, b1=1 => h1[AUG,:] == 1 (the bias-carrier row), rows >AUG are 0.
    h1 = jnp.maximum(w1_ref[...] * x + b1_ref[...], 0.0)          # (HP, TB)

    # Layer 2: 16x16 @ 16xTB on the MXU; bias is folded into column AUG of w2p, so
    # no separate VPU bias add. Row AUG of w2p keeps h2[AUG,:] == 1 after ReLU.
    h2 = jnp.maximum(
        jnp.dot(w2_ref[...], h1, preferred_element_type=jnp.float32), 0.0)  # (HP, TB)

    # Layer 3: N=1 -> VPU multiply + cross-sublane reduce (XLU slot, off the VALU).
    # Bias is folded into row AUG of w3p (multiplies the constant-one h2 row).
    y = jnp.sum(h2 * w3_ref[...], axis=0, keepdims=True)          # (1, TB)

    o_ref[...] = y.astype(o_ref.dtype)


def _pack_params(p):
    """Pad PyTorch-layout params to HP sublanes and fold biases of layers 2/3.

    PyTorch layout: weight (out, in), bias (out,).
      w1p (HP,1):  rows 0..9 = w1,  row AUG = 0
      b1p (HP,1):  rows 0..9 = b1,  row AUG = 1   -> h1[AUG] = relu(1) = 1
      w2p (HP,HP): [0:10,0:10] = w2, column AUG = b2, [AUG,AUG] = 1
      w3p (HP,1):  rows 0..9 = w3,  row AUG = b3
    """
    f32 = jnp.float32
    w1p = jnp.zeros((HP, 1), f32).at[:H, :].set(p["w1"].astype(f32))
    b1p = (jnp.zeros((HP, 1), f32)
           .at[:H, 0].set(p["b1"].astype(f32))
           .at[AUG, 0].set(1.0))
    w2p = (jnp.zeros((HP, HP), f32)
           .at[:H, :H].set(p["w2"].astype(f32))
           .at[:H, AUG].set(p["b2"].astype(f32))
           .at[AUG, AUG].set(1.0))
    w3p = (jnp.zeros((HP, 1), f32)
           .at[:H, 0].set(p["w3"][0].astype(f32))
           .at[AUG, 0].set(p["b3"][0].astype(f32)))
    return w1p, b1p, w2p, w3p


def mlp_forward(x, params, *, tb=8192):
    """x: (B, 1) float32. tb: batch tile on the lane axis (multiple of 128).

    Per-tile VMEM footprint at tb=8192: x/y tiles 32 KB each (double-buffered) plus
    (HP, tb) f32 temporaries ~512 KB each — comfortably within scoped VMEM on
    v5e/v6e/v7x, so tb can be raised further for very large batches.
    """
    B = x.shape[0]
    assert x.shape[1] == 1 and tb % 128 == 0

    # Transpose batch onto lanes: (B, 1) -> (1, B). Pure reshape, free.
    xT = x.astype(jnp.float32).reshape(1, B)

    # Pad batch up to a whole number of lane-dense tiles (pad lanes are sliced off).
    n_tiles = pl.cdiv(B, tb)
    Bp = n_tiles * tb
    if Bp != B:
        xT = jnp.pad(xT, ((0, 0), (0, Bp - B)))

    w1p, b1p, w2p, w3p = _pack_params(params)

    def resident(shape):
        # Constant block index => weight tile stays VMEM-resident across the grid.
        return pl.BlockSpec(shape, lambda i: (0, 0))

    out = pl.pallas_call(
        mlp_kernel,
        out_shape=jax.ShapeDtypeStruct((1, Bp), jnp.float32),
        grid_spec=pltpu.PrefetchScalarGridSpec(
            num_scalar_prefetch=0,
            grid=(n_tiles,),
            in_specs=[
                pl.BlockSpec((1, tb), lambda i: (0, i)),   # x tile (batch on lanes)
                resident((HP, 1)),                         # w1p
                resident((HP, 1)),                         # b1p (with constant-one row)
                resident((HP, HP)),                        # w2p (bias folded in col AUG)
                resident((HP, 1)),                         # w3p (bias folded in row AUG)
            ],
            out_specs=pl.BlockSpec((1, tb), lambda i: (0, i)),
        ),
        compiler_params=pltpu.CompilerParams(
            dimension_semantics=("parallel",),
        ),
    )(xT, w1p, b1p, w2p, w3p)

    return out[:, :B].reshape(B, 1)


def init_params(key):
    """Deterministic init mimicking PyTorch nn.Linear: weight (out, in), bias (out,)."""
    ks = jax.random.split(key, 6)

    def uniform(k, shape, fan_in):
        bound = 1.0 / jnp.sqrt(float(fan_in))
        return jax.random.uniform(k, shape, jnp.float32, -bound, bound)

    return {
        "w1": uniform(ks[0], (10, 1), 1),     # Linear(1, 10).weight
        "b1": uniform(ks[1], (10,), 1),       # Linear(1, 10).bias
        "w2": uniform(ks[2], (10, 10), 10),   # Linear(10, 10).weight
        "b2": uniform(ks[3], (10,), 10),      # Linear(10, 10).bias
        "w3": uniform(ks[4], (1, 10), 10),    # Linear(10, 1).weight
        "b3": uniform(ks[5], (1,), 10),       # Linear(10, 1).bias
    }


def mlp_ref(x, p):
    h1 = jnp.maximum(x @ p["w1"].T + p["b1"], 0.0)
    h2 = jnp.maximum(h1 @ p["w2"].T + p["b2"], 0.0)
    return h2 @ p["w3"].T + p["b3"]


if __name__ == "__main__":
    key = jax.random.PRNGKey(0)
    kx, kp = jax.random.split(key)

    # Small demo shape: B=1000 (not a multiple of 128 -> exercises the pad/slice
    # path) with tb=256 -> 4 lane-dense tiles on a "parallel" grid.
    B = 1000
    x = jax.random.normal(kx, (B, 1), dtype=jnp.float32)
    params = init_params(kp)

    out = mlp_forward(x, params, tb=256)
    out = jax.block_until_ready(out)

    ref = mlp_ref(x, params)
    assert out.shape == (B, 1)
    assert jnp.allclose(out, ref, atol=1e-5, rtol=1e-5)

    print("KERNEL_OK")
</pallas_src>

<mosaic_0001>
module attributes {stable_mosaic.version = 11 : i64} {
  func.func @mlp_kernel(%arg0: i32, %arg1: memref<1x256xf32, #tpu.memory_space<vmem>>, %arg2: memref<16x1xf32, #tpu.memory_space<vmem>>, %arg3: memref<16x1xf32, #tpu.memory_space<vmem>>, %arg4: memref<16x16xf32, #tpu.memory_space<vmem>>, %arg5: memref<16x1xf32, #tpu.memory_space<vmem>>, %arg6: memref<1x256xf32, #tpu.memory_space<vmem>>) attributes {dimension_semantics = [#tpu.dimension_semantics<parallel>], iteration_bounds = array<i64: 4>, scalar_prefetch = 0 : i64, scratch_operands = 0 : i64, tpu.core_type = #tpu.core_type<tc>, window_params = [{transform_indices = @transform_0, window_bounds = array<i64: 1, 256>}, {pipeline_mode = #tpu.pipeline_mode<synchronous>, transform_indices = @transform_1, window_bounds = array<i64: 16, 1>}, {pipeline_mode = #tpu.pipeline_mode<synchronous>, transform_indices = @transform_2, window_bounds = array<i64: 16, 1>}, {pipeline_mode = #tpu.pipeline_mode<synchronous>, transform_indices = @transform_3, window_bounds = array<i64: 16, 16>}, {pipeline_mode = #tpu.pipeline_mode<synchronous>, transform_indices = @transform_4, window_bounds = array<i64: 16, 1>}, {transform_indices = @transform_5, window_bounds = array<i64: 1, 256>}]} {
    %c0 = arith.constant 0 : index
    %c0_0 = arith.constant 0 : index
    %0 = vector.load %arg1[%c0, %c0_0] : memref<1x256xf32, #tpu.memory_space<vmem>>, vector<1x256xf32>
    %c0_1 = arith.constant 0 : index
    %c0_2 = arith.constant 0 : index
    %1 = vector.load %arg2[%c0_1, %c0_2] : memref<16x1xf32, #tpu.memory_space<vmem>>, vector<16x1xf32>
    %2 = vector.broadcast %1 : vector<16x1xf32> to vector<16x256xf32>
    %3 = vector.broadcast %0 : vector<1x256xf32> to vector<16x256xf32>
    %4 = arith.mulf %2, %3 : vector<16x256xf32>
    %c0_3 = arith.constant 0 : index
    %c0_4 = arith.constant 0 : index
    %5 = vector.load %arg3[%c0_3, %c0_4] : memref<16x1xf32, #tpu.memory_space<vmem>>, vector<16x1xf32>
    %6 = vector.broadcast %5 : vector<16x1xf32> to vector<16x256xf32>
    %7 = arith.addf %4, %6 : vector<16x256xf32>
    %cst = arith.constant 0.000000e+00 : f32
    %8 = vector.broadcast %cst : f32 to vector<16x256xf32>
    %9 = arith.maximumf %7, %8 : vector<16x256xf32>
    %c0_5 = arith.constant 0 : index
    %c0_6 = arith.constant 0 : index
    %10 = vector.load %arg4[%c0_5, %c0_6] : memref<16x16xf32, #tpu.memory_space<vmem>>, vector<16x16xf32>
    %cst_7 = arith.constant dense<0.000000e+00> : vector<16x256xf32>
    %11 = tpu.matmul %10, %9, %cst_7 {dimension_numbers = #tpu.dot_dimension_numbers<[1], [0], [0], [1], [0, 0, 1, 1], [], []>} : vector<16x16xf32>, vector<16x256xf32>, vector<16x256xf32> -> vector<16x256xf32>
    %cst_8 = arith.constant 0.000000e+00 : f32
    %12 = vector.broadcast %cst_8 : f32 to vector<16x256xf32>
    %13 = arith.maximumf %11, %12 : vector<16x256xf32>
    %c0_9 = arith.constant 0 : index
    %c0_10 = arith.constant 0 : index
    %14 = vector.load %arg5[%c0_9, %c0_10] : memref<16x1xf32, #tpu.memory_space<vmem>>, vector<16x1xf32>
    %15 = vector.broadcast %14 : vector<16x1xf32> to vector<16x256xf32>
    %16 = arith.mulf %13, %15 : vector<16x256xf32>
    %cst_11 = arith.constant dense<0.000000e+00> : vector<256xf32>
    %17 = vector.multi_reduction <add>, %16, %cst_11 [0] : vector<16x256xf32> to vector<256xf32>
    %18 = vector.shape_cast %17 : vector<256xf32> to vector<1x256xf32>
    %c0_12 = arith.constant 0 : index
    %c0_13 = arith.constant 0 : index
    %19 = vector.load %arg6[%c0_12, %c0_13] : memref<1x256xf32, #tpu.memory_space<vmem>>, vector<1x256xf32>
    tpu.vector_store %arg6[%c0_12, %c0_13], %18 {strides = array<i32>} : memref<1x256xf32, #tpu.memory_space<vmem>>, vector<1x256xf32>,
    return
  }
  func.func @transform_0(%arg0: i32) -> (i32, i32) {
    %c0_i32 = arith.constant 0 : i32
    %c0_i32_0 = arith.constant 0 : i32
    return %c0_i32, %arg0 : i32, i32
  }
  func.func @transform_1(%arg0: i32) -> (i32, i32) {
    %c0_i32 = arith.constant 0 : i32
    %c0_i32_0 = arith.constant 0 : i32
    %c0_i32_1 = arith.constant 0 : i32
    return %c0_i32, %c0_i32_0 : i32, i32
  }
  func.func @transform_2(%arg0: i32) -> (i32, i32) {
    %c0_i32 = arith.constant 0 : i32
    %c0_i32_0 = arith.constant 0 : i32
    %c0_i32_1 = arith.constant 0 : i32
    return %c0_i32, %c0_i32_0 : i32, i32
  }
  func.func @transform_3(%arg0: i32) -> (i32, i32) {
    %c0_i32 = arith.constant 0 : i32
    %c0_i32_0 = arith.constant 0 : i32
    %c0_i32_1 = arith.constant 0 : i32
    return %c0_i32, %c0_i32_0 : i32, i32
  }
  func.func @transform_4(%arg0: i32) -> (i32, i32) {
    %c0_i32 = arith.constant 0 : i32
    %c0_i32_0 = arith.constant 0 : i32
    %c0_i32_1 = arith.constant 0 : i32
    return %c0_i32, %c0_i32_0 : i32, i32
  }
  func.func @transform_5(%arg0: i32) -> (i32, i32) {
    %c0_i32 = arith.constant 0 : i32
    %c0_i32_0 = arith.constant 0 : i32
    return %c0_i32, %arg0 : i32, i32
  }
}

</mosaic_0001>

<bundles_post_ra>
// kernel: tpu_custom_call.1
= control target key start
LH: loop header
LB: loop body
LE: loop exit
PB: predicated region body
PF: predicated region fallthrough
CT: control target
= control target key end

     0   :  { %10 = vsyncpa [#allocation3], 0  ;;  %s760_s0 = inlined_call_operand.vmem [shape: f32[1,1024], index: 0, kind: input, shape index: {}]   ;;  %s761_s1 = inlined_call_operand.vmem [shape: f32[16,1], index: 1, kind: input, shape index: {}]   ;;  %s762_s2 = inlined_call_operand.vmem [shape: f32[16,1], index: 2, kind: input, shape index: {}]   ;;  %s763_s3 = inlined_call_operand.vmem [shape: f32[16,16], index: 3, kind: input, shape index: {}]   ;;  %s764_s4 = inlined_call_operand.vmem [shape: f32[16,1], index: 4, kind: input, shape index: {}]   ;;  %s765_s5 = inlined_call_operand.hbm [shape: f32[1,1024], index: 5, kind: output, shape index: {}]  }
   0x1   :  { %12 = vsyncpa [#allocation3 + $0x1], 0  ;;  %s643_s18 = smov 0   ;;  %s645_s19 = smov 0  }
   0x2   :  { %s647_s20 = smov 0   ;;  %s649_s21 = smov 0  }
   0x3 LB: > { %s664_s22 = sadd.s32 4294967295, %s607_s21   ;;  %s485_s23 = sadd.s32 4294967294, %s607_s21   ;;  %s607_s21 = sphi %s649_s21, %s771_s21   ;;  %s603_s20 = sphi %s647_s20, %s770_s20   ;;  %s599_s19 = sphi %s645_s19, %s769_s19   ;;  %s595_s18 = sphi %s643_s18, %s768_s18  }
   0x4   : > { %s668_s24 = sadd.s32 1, %s607_s21   ;;  %s135_s25 = sadd.s32 1, %s603_s20 }
   0x5   : > { %s132_s26 = ssub.s32 %s607_s21, %s668_s24  ;;  %p145_p0 = scmp.ne.s32.totalorder %s603_s20, %s599_s19 }
   0x6   : > { %p133_p1 = scmp.eq.s32.totalorder %s132_s26, 0  ;;  %p146_p2 = scmp.eq.s32.totalorder %s664_s22, 3 }
   0x7   : > { %p151_p3 = scmp.ne.s32.totalorder %s599_s19, %s595_s18  ;;  %p152_p4 = scmp.eq.s32.totalorder %s485_s23, 3 }
   0x8   : > { %s679_s27 = scalar_select %p133_p1, %s603_s20, %s135_s25  }
   0x9   : > { %p681_p5 = por %p146_p2, %p145_p0  ;;  %p685_p6 = por %p152_p4, %p151_p3 }
   0xa   : > { %p488_p7 = scmp.ge.s32.totalorder %s607_s21, 1  ;;  %p190_p8 = scmp.lt.s32.totalorder %s607_s21, 5 }
   0xc   : > { %p191_p9 = pnand %p488_p7, %p190_p8 }
   0xd   : > { %s490_s17 = sshll.u32 (!%p191_p9), %s664_s22, 1  ;;  %s214_s9 = sand.u32 (!%p191_p9), 1, %s599_s19  }
   0xe   : > { %194 = sbr.rel (%p191_p9) target bundleno = 389 (0x185), region = 40  ;;  %p218_p10 = scmp.lt.s32.totalorder (!%p191_p9), %s490_s17, 7 }
   0xf   : > { %s489_s10 = sshll.u32 (!%p191_p9), %s214_s9, 1  ;;  %s498_s11 = sshll.u32 (!%p191_p9), %s664_s22, 5 }
  0x10   : > { %s216_s12 = scalar_lea.vmem (!%p191_p9), [#allocation2], %s489_s10  ;;  %s427_s16 = scalar_lea.hbm (!%p191_p9), %s765_s5, %s498_s11 }
  0x11   : > { %s429_s13 = sshll.u32 (!%p191_p9), %s216_s12, 4  ;;  %s612_s25 = smov (!%p191_p9), [#allocation2]   ;;  %s430_s13 = int_to_ptr.vmem [resolvable:$true] %s429_s13 }
  0x12   : > { %s547_s23 = scalar_lea.vmem (!%p191_p9), %s430_s13, 32  ;;  %s551_s22 = sshll.u32 (!%p191_p9), %s612_s25, 4  ;;  %s552_s22 = int_to_ptr.vmem [resolvable:$false] %s551_s22 }
  0x13   : > { %v252_v0 = vld [vmem:[%s762_s2 + $0x8] sm:$0xff]  ;;  %v609_v2 = vmov 0   ;;  %v251_v3 = vld [vmem:[%s762_s2] sm:$0xff]  ;;  %v610_v7 = vmov 0.0   ;;  %v237_v8 = vlaneseq  ;;  %s773_s17 = smov (!%p218_p10, %s490_s17), 7  ;;  %vm273_vm0 = vcmask 130048   ;;  %p548_p11 = scmp.ne.s32.totalorder %s430_s13, %s547_s23 }
  0x14   : > { %v225_v1 = vld [vmem:[%s761_s1 + $0x8] sm:$0xff]  ;;  %546 = vset.pattern.permute.xlu1 %v609_v2  ;;  %545 = vset.pattern.permute.xlu0 %v609_v2  ;;  %v224_v4 = vld [vmem:[%s761_s1] sm:$0xff]  ;;  %s220_s26 = scalar_lea.vmem %s760_s0, %s773_s17  ;;  %v611_v54 = vmov 1966171168   ;;  %s415_s17 = scalar_lea.sflag [#allocation3], %s214_s9 }
  0x15   : > { %260 = vperm.xlu1 %546, %v252_v0   ;;  %233 = vperm.xlu0 %545, %v225_v1   ;;  %v362_v5 = vld [vmem:[%s764_s4 + $0x8] sm:$0xff]  ;;  %v361_v6 = vld [vmem:[%s764_s4] sm:$0xff]  ;;  %v711_v9 = vshrl.u32 %v237_v8, 7  ;;  %v395_v55 = vunpack.c.l.s4 %v611_v54  ;;  %vm411_vm1 = vcmp.lt.s32.totalorder %v237_v8, 256  ;;  %p549_p12 = pnand %p548_p11, %p681_p5  ;;  %p554_p0 = scmp.lt.s32.totalorder %s430_s13, %s552_s22 }
  0x16   : > { %344 = vmatprep.mubr.f32.mxu0 %v610_v7  ;;  %350 = vmatprep.mubr.f32.mxu1 %v610_v7  ;;  %v223_v12 = vld [vmem:[%s220_s26] sm:$0x3]  ;;  %v272_v32 = vld [vmem:[%s763_s3 + $0x8] sm:$0xff]  ;;  %s553_s26 = scalar_lea.vmem %s552_s22, 64 }
  0x17   : > { %v239_v10 = vsub.s32 0, %v711_v9  ;;  %v243_v11 = vsub.s32 1, %v711_v9  ;;  %v271_v31 = vld [vmem:[%s763_s3] sm:$0xff]  ;;  %v396_v60 = vunpack.c.0.s8 %v395_v55  ;;  %p550_p13 = pneg %p549_p12  ;;  %p555_p1 = scmp.lt.s32.totalorder %s553_s26, %s547_s23 }
  0x19   : > { %255 = vperm.xlu1 %546, %v251_v3   ;;  %228 = vperm.xlu0 %545, %v224_v4   ;;  %v240_v13 = vrot.slane %v223_v12, %v239_v10  ;;  %v244_v14 = vrot.slane %v223_v12, %v243_v11  ;;  %v399_v0 = vsub.s32 %v396_v60, %v711_v9  ;;  %p556_p2 = por %p555_p1, %p554_p0 }
  0x1b   : > { %p557_p3 = pnand %p556_p2, %p550_p13 }
  0x1d   : > { %370 = vperm.xlu1 %546, %v362_v5   ;;  %365 = vperm.xlu0 %545, %v361_v6  }
  0x90   : > { %v261_v15 = vpop.permute.xlu1 %260  ;;  %v234_v16 = vpop.permute.xlu0 %233 }
  0x91   : > { %v249_v17 = vmul.f32 %v240_v13, %v234_v16  ;;  %v250_v18 = vmul.f32 %v244_v14, %v234_v16 }
  0x93   : > { %v266_v19 = vadd.f32 %v261_v15, %v250_v18  ;;  %v265_v20 = vadd.f32 %v261_v15, %v249_v17 }
  0x94   : > { %v229_v21 = vpop.permute.xlu0 %228  ;;  %v256_v26 = vpop.permute.xlu1 %255 }
  0x95   : > { %v247_v22 = vmul.f32 %v240_v13, %v229_v21  ;;  %v248_v23 = vmul.f32 %v244_v14, %v229_v21  ;;  %v270_v24 = vmax.f32 %v266_v19, 0.0  ;;  %v269_v25 = vmax.f32 %v265_v20, 0.0 }
  0x97   : > { %v263_v27 = vadd.f32 %v256_v26, %v247_v22  ;;  %v264_v28 = vadd.f32 %v256_v26, %v248_v23  ;;  %308 = vmatprep.subr.mxu0 %v270_v24  ;;  %499 = vmatprep.subr.mxu1 %v270_v24 }
  0x98   : > { %309 = vmatpush1.msra.mxu0 %v269_v25  ;;  %501 = vmatpush1.msra.mxu1 %v269_v25  ;;  %v371_v35 = vpop.permute.xlu1 %370  ;;  %v366_v36 = vpop.permute.xlu0 %365 }
  0x99   : > { %v268_v29 = vmax.f32 %v264_v28, 0.0  ;;  %v267_v30 = vmax.f32 %v263_v27, 0.0 }
  0x9b   : > { %310 = vmatprep.subr.mxu0 %v268_v29  ;;  %500 = vmatprep.subr.mxu1 %v268_v29 }
  0x9c   : > { %311 = vmatpush1.msra.mxu0 %v267_v30  ;;  %502 = vmatpush1.msra.mxu1 %v267_v30 }
  0x9d   : > { %491 = vmatmul.mubr.msk.f32.vlgmr.msra.gmra.mxu0 %vm273_vm0, %v271_v31  ;;  %492 = vmatmul.mubr.msk.f32.vlgmr.msra.gmra.mxu1 %vm273_vm0, %v272_v32 }
 0x15d   : > { %v346_v33 = vpop.f32.mrf.mxu0  ;;  %v352_v34 = vpop.f32.mrf.mxu1 }
 0x15e   : > { %v357_v37 = vmax.f32 %v346_v33, 0.0  ;;  %v359_v38 = vmax.f32 %v352_v34, 0.0 }
 0x15f   : > { %v348_v39 = vpop.f32.mrf.mxu0  ;;  %v354_v40 = vpop.f32.mrf.mxu1 }
 0x160   : > { %v373_v41 = vmul.f32 %v366_v36, %v357_v37  ;;  %v375_v42 = vmul.f32 %v371_v35, %v359_v38  ;;  %v358_v43 = vmax.f32 %v348_v39, 0.0  ;;  %v360_v44 = vmax.f32 %v354_v40, 0.0 }
 0x162   : > { %v377_v45 = vadd.f32 %v375_v42, %v373_v41  ;;  %v374_v46 = vmul.f32 %v366_v36, %v358_v43  ;;  %v376_v47 = vmul.f32 %v371_v35, %v360_v44 }
 0x164   : > { %v378_v48 = vrot.slane %v377_v45, 4  ;;  %v384_v49 = vadd.f32 %v376_v47, %v374_v46 }
 0x166   : > { %v379_v50 = vadd.f32 %v378_v48, %v377_v45  ;;  %v385_v51 = vrot.slane %v384_v49, 4 }
 0x168   : > { %v380_v52 = vrot.slane %v379_v50, 2  ;;  %v386_v53 = vadd.f32 %v385_v51, %v384_v49 }
 0x16a   : > { %v381_v56 = vadd.f32 %v380_v52, %v379_v50  ;;  %v387_v57 = vrot.slane %v386_v53, 2 }
 0x16c   : > { %v382_v58 = vrot.slane %v381_v56, 1  ;;  %v388_v59 = vadd.f32 %v387_v57, %v386_v53 }
 0x16e   : > { %v389_v61 = vrot.slane %v388_v59, 1  ;;  %v383_v62 = vadd.f32 %v382_v58, %v381_v56 }
 0x170   : > { %v390_v63 = vadd.f32 %v389_v61, %v388_v59 }
 0x172   : > { %v393_v1 = vcombine.low %v383_v62, %v390_v63 }
 0x174   : > { %v400_v2 = vrot.slane %v393_v1, %v399_v0 }
 0x176   : > { %v407_v3 = vrot.slane %v400_v2, %v399_v0 }
 0x178   : > { %413 = vst.msk [vmem:[%s216_s12] sm:$0x3] %vm411_vm1, %v407_v3 }
 0x179   : > { %560 = shalt.err (!%p557_p3)
}
 0x17a   : > { %s561_s30 = scalar_lea.hbm %s427_s16, 32  ;;  %s565_s8 = scalar_lea.hbm %s765_s5, 128 }
 0x17b   : > { %p562_p4 = scmp.ne.s32.totalorder %s427_s16, %s561_s30  ;;  %p566_p9 = scmp.lt.s32.totalorder %s427_s16, %s765_s5 }
 0x17c   : > { %p567_p10 = scmp.lt.s32.totalorder %s565_s8, %s561_s30 }
 0x17d   : > { %p563_p7 = pnand %p562_p4, %p681_p5 }
 0x17e   : > { %p568_p11 = por %p567_p10, %p566_p9 }
 0x17f   : > { %p564_p8 = pneg %p563_p7 }
 0x181   : > { %p569_p12 = pnand %p568_p11, %p564_p8 }
 0x183   : > { %572 = shalt.err (!%p569_p12)
}
 0x184   : > { %503 = dma.vmem_to_hbm [thread:$0]  (%p681_p5), %s430_s13, 32, %s427_s16, %s415_s17  }
 0x185 PF: > { %p509_p13 = scmp.ge.s32.totalorder %s607_s21, 2  ;;  %s441_s11 = sand.u32 1, %s595_s18  }
 0x186   : > { %s442_s12 = scalar_lea.sflag [#allocation3], %s441_s11 }
 0x187   : > { %p506_p0 = pnand %p509_p13, %p685_p6 }
 0x189   : > { %p507_p1 = pneg %p506_p0 }
 0x18b   : > { %590 = dma.done.wait (%p507_p1), %s442_s12, 32  }
 0x18c   : > { %592 = vsyncadd (%p507_p1), %s442_s12, 4294967264  ;;  %p15_p2 = scmp.ge.s32.totalorder %s668_s24, 6   ;;  %s768_s18 = smov %s599_s19 }
 0x18d   : > { %s769_s19 = smov %s603_s20  ;;  %s770_s20 = smov %s679_s27 }
 0x18e   : > { %s771_s21 = smov %s668_s24  ;;  %17 = sbr.rel (!%p15_p2) target bundleno = 3 (0x3), region = 75 }
 0x193   :  { %447 = vsyncpa [#allocation3], 1 }
 0x194   :  { %449 = vsyncpa [#allocation3 + $0x1], 1 }

</bundles_post_ra>
